<compile_context>
chip_gen: v7x
topology: tpu7x:2x2x1
jax: 0.10.0
libtpu: 0.0.40
codegen_flags: <defaults>
</compile_context>

<pallas_src>
import functools
import math
from typing import NamedTuple

import jax
import jax.numpy as jnp
from jax.experimental import pallas as pl
from jax.experimental.pallas import tpu as pltpu

_SQRT_HALF = 0.7071067811865476
_SQRT_2_OVER_PI = 0.7978845608028654


def _round_up(x, m):
    return (x + m - 1) // m * m


def _erf(x):
    # Abramowitz & Stegun 7.1.26 polynomial, |error| < 1.5e-7 — numerically
    # equivalent to exact erf at f32, built only from ops guaranteed to lower
    # in Mosaic (mul/add/div/exp/select).
    a1 = 0.254829592
    a2 = -0.284496736
    a3 = 1.421413741
    a4 = -1.453152027
    a5 = 1.061405429
    p = 0.3275911
    ax = jnp.abs(x)
    t = 1.0 / (1.0 + p * ax)
    poly = ((((a5 * t + a4) * t + a3) * t + a2) * t + a1) * t
    y = 1.0 - poly * jnp.exp(-ax * ax)
    return jnp.where(x < 0.0, -y, y)


def _gelu(x, approximate):
    if approximate == "tanh":
        # torch.nn.GELU(approximate="tanh"): one EUP tanh + a handful of VPU
        # ops replaces the ~20-op f32 erf polynomial. Recommended on v6e/v7x
        # bf16 where the erf chain makes the VALU slot (not the MXU) the
        # saturated unit.
        inner = _SQRT_2_OVER_PI * (x + 0.044715 * (x * x * x))
        return 0.5 * x * (1.0 + jnp.tanh(inner))
    # Exact erf GELU — matches torch.nn.GELU() (default approximate='none').
    return 0.5 * x * (1.0 + _erf(x * _SQRT_HALF))


def _mlp_kernel(x_ref, w1_ref, b1_ref, w2_ref, b2_ref, o_ref, *, approximate):
    # x_ref : (tm, Kp)  row tile of the flattened input
    # w1_ref: (Kp, Hp)  fc1 weight (in x hidden), VMEM-resident (1 buffer)
    # b1_ref: (1, Hp)   f32
    # w2_ref: (Hp, Ep)  fc2 weight (hidden x out), VMEM-resident (1 buffer)
    # b2_ref: (1, Ep)   f32
    # o_ref : (tm, Ep)
    h = jnp.dot(x_ref[...], w1_ref[...], preferred_element_type=jnp.float32)
    h = _gelu(h + b1_ref[...], approximate)
    # Dropout(p=0.0) is the identity (and a no-op in eval mode).
    # TODO(synk): stochastic dropout (p > 0, training mode) not implemented;
    # would use pltpu.prng_seed + pltpu.stateful_bernoulli.
    o = jnp.dot(h.astype(w2_ref.dtype), w2_ref[...],
                preferred_element_type=jnp.float32)
    o_ref[...] = (o + b2_ref[...]).astype(o_ref.dtype)


class MlpParams(NamedTuple):
    w1t: jax.Array  # (Kp, Hp) compute dtype, fc1 weight transposed + padded
    b1: jax.Array   # (1, Hp) f32
    w2t: jax.Array  # (Hp, Ep) compute dtype, fc2 weight transposed + padded
    b2: jax.Array   # (1, Ep) f32


def prepare_mlp_params(w1, b1, w2, b2, *, compute_dtype=None) -> MlpParams:
    """One-time weight prep (do this OUTSIDE the per-step path).

    Transposes nn.Linear weights to (in, hidden)/(hidden, out), casts to the
    compute dtype, and zero-pads lane dims to multiples of 128 so the per-call
    path never re-reads/re-writes the weights through HBM.
    """
    H, K = w1.shape
    E, H1 = w2.shape
    assert H1 == H, "fc2 in_features must equal fc1 out_features"
    cdt = jnp.dtype(compute_dtype) if compute_dtype is not None else jnp.dtype(w1.dtype)
    Kp, Hp, Ep = _round_up(K, 128), _round_up(H, 128), _round_up(E, 128)

    w1t = w1.T.astype(cdt)
    w2t = w2.T.astype(cdt)
    if (Kp, Hp) != (K, H):
        w1t = jnp.pad(w1t, ((0, Kp - K), (0, Hp - H)))
    if (Hp, Ep) != (H, E):
        w2t = jnp.pad(w2t, ((0, Hp - H), (0, Ep - E)))
    b1p = jnp.pad(b1.astype(jnp.float32), (0, Hp - H)).reshape(1, Hp)
    b2p = jnp.pad(b2.astype(jnp.float32), (0, Ep - E)).reshape(1, Ep)
    return MlpParams(w1t, b1p, w2t, b2p)


@functools.partial(jax.jit, static_argnames=("out_features", "gelu", "block_m"))
def mlp_forward(x, params: MlpParams, *, out_features, gelu="exact", block_m=None):
    """Forward pass of the ViT Mlp module with prepared params.

    x: (..., in_features); returns (..., out_features), same dtype as x.
    """
    orig_dtype = x.dtype
    *lead, K = x.shape
    Kp, Hp = params.w1t.shape
    Hp2, Ep = params.w2t.shape
    assert Hp2 == Hp and K <= Kp, "params inconsistent with input"
    E = out_features
    assert E <= Ep
    cdt = params.w1t.dtype

    M = math.prod(lead) if lead else 1
    x2 = x.reshape(M, K)
    if x2.dtype != cdt:
        x2 = x2.astype(cdt)
    if K != Kp:
        # Only when in_features is not already a multiple of 128 (never the
        # case for real ViT widths) — avoids a per-call full copy of x.
        x2 = jnp.pad(x2, ((0, 0), (0, Kp - K)))

    # --- per-generation-safe tile + VMEM budgeting ---------------------------
    c_isz = cdt.itemsize
    out_isz = jnp.dtype(orig_dtype).itemsize
    if block_m is None:
        block_m = 512 if c_isz <= 2 else 256  # v6e/v7x sweet spots (perf review)
    tm = max(8, _round_up(min(block_m, _round_up(M, 8)), 8))

    # Resident (single-buffered) weights + biases.
    weight_bytes = (Kp * Hp + Hp * Ep) * c_isz + (Hp + Ep) * 4

    def footprint(t):
        return (weight_bytes
                + 2 * t * Kp * c_isz      # double-buffered x tiles
                + 2 * t * Ep * out_isz    # double-buffered out tiles
                + t * Hp * 4)             # f32 hidden intermediate

    VMEM_BUDGET = 48 * 1024 * 1024  # conservative vs v7x's 64 MiB/TC
    while tm > 8 and footprint(tm) > VMEM_BUDGET:
        tm = max(8, _round_up(tm // 2, 8))
    # TODO(synk): if the resident weights alone exceed the budget (ViT-L/H f32
    # or LLM-style MLPs on v7x), add an "arbitrary" grid axis tiling Hp and
    # accumulate fc2 into a (tm, Ep) f32 scratch with pl.when init/writeback.
    vmem_limit = min(int(footprint(tm) * 1.25) + (1 << 20), 128 * 1024 * 1024)

    grid_m = pl.cdiv(M, tm)
    m_compute = grid_m * tm
    n_trans = 2 if gelu == "exact" else 1  # exp + divide (exact) vs tanh
    cost = pl.CostEstimate(
        flops=2 * m_compute * Kp * Hp + 2 * m_compute * Hp * Ep,
        transcendentals=n_trans * m_compute * Hp,
        bytes_accessed=(M * Kp * c_isz + (Kp * Hp + Hp * Ep) * c_isz
                        + (Hp + Ep) * 4 + M * Ep * out_isz),
    )

    resident = pl.Buffered(1)  # constant index_map -> one VMEM buffer, fetched once
    out = pl.pallas_call(
        functools.partial(_mlp_kernel, approximate=gelu),
        out_shape=jax.ShapeDtypeStruct((M, Ep), orig_dtype),
        grid_spec=pltpu.PrefetchScalarGridSpec(
            num_scalar_prefetch=0,
            grid=(grid_m,),
            in_specs=[
                pl.BlockSpec((tm, Kp), lambda i: (i, 0)),  # new row tile / step
                pl.BlockSpec((Kp, Hp), lambda i: (0, 0), pipeline_mode=resident),
                pl.BlockSpec((1, Hp), lambda i: (0, 0), pipeline_mode=resident),
                pl.BlockSpec((Hp, Ep), lambda i: (0, 0), pipeline_mode=resident),
                pl.BlockSpec((1, Ep), lambda i: (0, 0), pipeline_mode=resident),
            ],
            out_specs=pl.BlockSpec((tm, Ep), lambda i: (i, 0)),
        ),
        compiler_params=pltpu.CompilerParams(
            dimension_semantics=("parallel",),
            vmem_limit_bytes=vmem_limit),
        cost_estimate=cost,
    )(x2, params.w1t, params.b1, params.w2t, params.b2)

    if E != Ep:
        out = out[:, :E]
    return out.reshape(*lead, E)


def mlp_forward_torch_params(x, w1, b1, w2, b2, *, compute_dtype=None,
                             gelu="exact", block_m=None):
    """Convenience wrapper taking torch nn.Linear-layout weights.

    Production callers should call prepare_mlp_params() once and reuse the
    result; this wrapper preps per call (fine for testing / small models).
    """
    params = prepare_mlp_params(w1, b1, w2, b2, compute_dtype=compute_dtype)
    return mlp_forward(x, params, out_features=w2.shape[0],
                       gelu=gelu, block_m=block_m)


def _mlp_reference(x, w1, b1, w2, b2):
    # Same math as the PyTorch module in f32 (exact erf GELU, dropout p=0).
    h = x @ w1.T + b1
    h = jax.nn.gelu(h, approximate=False)
    return h @ w2.T + b2


if __name__ == "__main__":
    B, N = 2, 8
    in_features = 32
    hidden_features = 64
    out_features = 32

    key = jax.random.PRNGKey(0)
    kx, k1, k2, k3, k4 = jax.random.split(key, 5)
    x = jax.random.normal(kx, (B, N, in_features), dtype=jnp.float32)
    w1 = jax.random.normal(k1, (hidden_features, in_features), jnp.float32) * 0.05
    b1 = jax.random.normal(k2, (hidden_features,), jnp.float32) * 0.05
    w2 = jax.random.normal(k3, (out_features, hidden_features), jnp.float32) * 0.05
    b2 = jax.random.normal(k4, (out_features,), jnp.float32) * 0.05

    ref = _mlp_reference(x, w1, b1, w2, b2)

    # 1) Default path: f32 compute, exact erf GELU (bit-faithful to the module
    #    up to float associativity).
    out = jax.block_until_ready(mlp_forward_torch_params(x, w1, b1, w2, b2))
    assert out.shape == (B, N, out_features)
    assert jnp.allclose(out, ref, atol=1e-4, rtol=1e-4), \
        float(jnp.max(jnp.abs(out - ref)))

    # 2) Recommended production path on v6e/v7x: bf16 MXU inputs, f32
    #    accumulation, tanh-approx GELU (EUP tanh instead of the erf VALU chain).
    params_bf16 = prepare_mlp_params(w1, b1, w2, b2, compute_dtype=jnp.bfloat16)
    out_bf16 = jax.block_until_ready(
        mlp_forward(x, params_bf16, out_features=out_features, gelu="tanh"))
    assert out_bf16.shape == (B, N, out_features)
    assert jnp.allclose(out_bf16, ref, atol=2e-2, rtol=2e-2), \
        float(jnp.max(jnp.abs(out_bf16 - ref)))

    print("KERNEL_OK")
</pallas_src>

<mosaic_0001>
module attributes {stable_mosaic.version = 11 : i64} {
  func.func @_mlp_kernel(%arg0: i32, %arg1: memref<16x128xf32, #tpu.memory_space<vmem>>, %arg2: memref<128x128xf32, #tpu.memory_space<vmem>>, %arg3: memref<1x128xf32, #tpu.memory_space<vmem>>, %arg4: memref<128x128xf32, #tpu.memory_space<vmem>>, %arg5: memref<1x128xf32, #tpu.memory_space<vmem>>, %arg6: memref<16x128xf32, #tpu.memory_space<vmem>>) attributes {dimension_semantics = [#tpu.dimension_semantics<parallel>], iteration_bounds = array<i64: 1>, scalar_prefetch = 0 : i64, scratch_operands = 0 : i64, tpu.core_type = #tpu.core_type<tc>, window_params = [{transform_indices = @transform_0, window_bounds = array<i64: 16, 128>}, {pipeline_mode = #tpu.pipeline_mode<synchronous>, transform_indices = @transform_1, window_bounds = array<i64: 128, 128>}, {pipeline_mode = #tpu.pipeline_mode<synchronous>, transform_indices = @transform_2, window_bounds = array<i64: 1, 128>}, {pipeline_mode = #tpu.pipeline_mode<synchronous>, transform_indices = @transform_3, window_bounds = array<i64: 128, 128>}, {pipeline_mode = #tpu.pipeline_mode<synchronous>, transform_indices = @transform_4, window_bounds = array<i64: 1, 128>}, {transform_indices = @transform_5, window_bounds = array<i64: 16, 128>}]} {
    %c0 = arith.constant 0 : index
    %c0_0 = arith.constant 0 : index
    %0 = vector.load %arg1[%c0, %c0_0] : memref<16x128xf32, #tpu.memory_space<vmem>>, vector<16x128xf32>
    %c0_1 = arith.constant 0 : index
    %c0_2 = arith.constant 0 : index
    %1 = vector.load %arg2[%c0_1, %c0_2] : memref<128x128xf32, #tpu.memory_space<vmem>>, vector<128x128xf32>
    %cst = arith.constant dense<0.000000e+00> : vector<16x128xf32>
    %2 = tpu.matmul %0, %1, %cst {dimension_numbers = #tpu.dot_dimension_numbers<[1], [0], [0], [1], [0, 0, 1, 1], [], []>} : vector<16x128xf32>, vector<128x128xf32>, vector<16x128xf32> -> vector<16x128xf32>
    %c0_3 = arith.constant 0 : index
    %c0_4 = arith.constant 0 : index
    %3 = vector.load %arg3[%c0_3, %c0_4] : memref<1x128xf32, #tpu.memory_space<vmem>>, vector<1x128xf32>
    %4 = vector.broadcast %3 : vector<1x128xf32> to vector<16x128xf32>
    %5 = arith.addf %2, %4 : vector<16x128xf32>
    %cst_5 = arith.constant 5.000000e-01 : f32
    %6 = vector.broadcast %cst_5 : f32 to vector<16x128xf32>
    %7 = arith.mulf %6, %5 : vector<16x128xf32>
    %cst_6 = arith.constant 0.707106769 : f32
    %8 = vector.broadcast %cst_6 : f32 to vector<16x128xf32>
    %9 = arith.mulf %5, %8 : vector<16x128xf32>
    %10 = math.absf %9 : vector<16x128xf32>
    %cst_7 = arith.constant 0.327591091 : f32
    %11 = vector.broadcast %cst_7 : f32 to vector<16x128xf32>
    %12 = arith.mulf %11, %10 : vector<16x128xf32>
    %cst_8 = arith.constant 1.000000e+00 : f32
    %13 = vector.broadcast %cst_8 : f32 to vector<16x128xf32>
    %14 = arith.addf %13, %12 : vector<16x128xf32>
    %cst_9 = arith.constant 1.000000e+00 : f32
    %15 = vector.broadcast %cst_9 : f32 to vector<16x128xf32>
    %16 = arith.divf %15, %14 : vector<16x128xf32>
    %cst_10 = arith.constant 1.06140542 : f32
    %17 = vector.broadcast %cst_10 : f32 to vector<16x128xf32>
    %18 = arith.mulf %17, %16 : vector<16x128xf32>
    %cst_11 = arith.constant -1.45315206 : f32
    %19 = vector.broadcast %cst_11 : f32 to vector<16x128xf32>
    %20 = arith.addf %18, %19 : vector<16x128xf32>
    %21 = arith.mulf %20, %16 : vector<16x128xf32>
    %cst_12 = arith.constant 1.42141378 : f32
    %22 = vector.broadcast %cst_12 : f32 to vector<16x128xf32>
    %23 = arith.addf %21, %22 : vector<16x128xf32>
    %24 = arith.mulf %23, %16 : vector<16x128xf32>
    %cst_13 = arith.constant -0.284496725 : f32
    %25 = vector.broadcast %cst_13 : f32 to vector<16x128xf32>
    %26 = arith.addf %24, %25 : vector<16x128xf32>
    %27 = arith.mulf %26, %16 : vector<16x128xf32>
    %cst_14 = arith.constant 0.254829586 : f32
    %28 = vector.broadcast %cst_14 : f32 to vector<16x128xf32>
    %29 = arith.addf %27, %28 : vector<16x128xf32>
    %30 = arith.mulf %29, %16 : vector<16x128xf32>
    %cst_15 = arith.constant 0.000000e+00 : f32
    %31 = vector.broadcast %cst_15 : f32 to vector<16x128xf32>
    %32 = arith.subf %31, %10 : vector<16x128xf32>
    %33 = arith.mulf %32, %10 : vector<16x128xf32>
    %34 = math.exp %33 : vector<16x128xf32>
    %35 = arith.mulf %30, %34 : vector<16x128xf32>
    %cst_16 = arith.constant 1.000000e+00 : f32
    %36 = vector.broadcast %cst_16 : f32 to vector<16x128xf32>
    %37 = arith.subf %36, %35 : vector<16x128xf32>
    %cst_17 = arith.constant 0.000000e+00 : f32
    %38 = vector.broadcast %cst_17 : f32 to vector<16x128xf32>
    %39 = arith.cmpf olt, %9, %38 : vector<16x128xf32>
    %cst_18 = arith.constant 0.000000e+00 : f32
    %40 = vector.broadcast %cst_18 : f32 to vector<16x128xf32>
    %41 = arith.subf %40, %37 : vector<16x128xf32>
    %42 = arith.select %39, %41, %37 : vector<16x128xi1>, vector<16x128xf32>
    %cst_19 = arith.constant 1.000000e+00 : f32
    %43 = vector.broadcast %cst_19 : f32 to vector<16x128xf32>
    %44 = arith.addf %43, %42 : vector<16x128xf32>
    %45 = arith.mulf %7, %44 : vector<16x128xf32>
    %c0_20 = arith.constant 0 : index
    %c0_21 = arith.constant 0 : index
    %46 = vector.load %arg4[%c0_20, %c0_21] : memref<128x128xf32, #tpu.memory_space<vmem>>, vector<128x128xf32>
    %cst_22 = arith.constant dense<0.000000e+00> : vector<16x128xf32>
    %47 = tpu.matmul %45, %46, %cst_22 {dimension_numbers = #tpu.dot_dimension_numbers<[1], [0], [0], [1], [0, 0, 1, 1], [], []>} : vector<16x128xf32>, vector<128x128xf32>, vector<16x128xf32> -> vector<16x128xf32>
    %c0_23 = arith.constant 0 : index
    %c0_24 = arith.constant 0 : index
    %48 = vector.load %arg5[%c0_23, %c0_24] : memref<1x128xf32, #tpu.memory_space<vmem>>, vector<1x128xf32>
    %49 = vector.broadcast %48 : vector<1x128xf32> to vector<16x128xf32>
    %50 = arith.addf %47, %49 : vector<16x128xf32>
    %c0_25 = arith.constant 0 : index
    %c0_26 = arith.constant 0 : index
    %51 = vector.load %arg6[%c0_25, %c0_26] : memref<16x128xf32, #tpu.memory_space<vmem>>, vector<16x128xf32>
    tpu.vector_store %arg6[%c0_25, %c0_26], %50 {strides = array<i32>} : memref<16x128xf32, #tpu.memory_space<vmem>>, vector<16x128xf32>,
    return
  }
  func.func @transform_0(%arg0: i32) -> (i32, i32) {
    %c0_i32 = arith.constant 0 : i32
    %c0_i32_0 = arith.constant 0 : i32
    return %arg0, %c0_i32 : i32, i32
  }
  func.func @transform_1(%arg0: i32) -> (i32, i32) {
    %c0_i32 = arith.constant 0 : i32
    %c0_i32_0 = arith.constant 0 : i32
    %c0_i32_1 = arith.constant 0 : i32
    return %c0_i32, %c0_i32_0 : i32, i32
  }
  func.func @transform_2(%arg0: i32) -> (i32, i32) {
    %c0_i32 = arith.constant 0 : i32
    %c0_i32_0 = arith.constant 0 : i32
    %c0_i32_1 = arith.constant 0 : i32
    return %c0_i32, %c0_i32_0 : i32, i32
  }
  func.func @transform_3(%arg0: i32) -> (i32, i32) {
    %c0_i32 = arith.constant 0 : i32
    %c0_i32_0 = arith.constant 0 : i32
    %c0_i32_1 = arith.constant 0 : i32
    return %c0_i32, %c0_i32_0 : i32, i32
  }
  func.func @transform_4(%arg0: i32) -> (i32, i32) {
    %c0_i32 = arith.constant 0 : i32
    %c0_i32_0 = arith.constant 0 : i32
    %c0_i32_1 = arith.constant 0 : i32
    return %c0_i32, %c0_i32_0 : i32, i32
  }
  func.func @transform_5(%arg0: i32) -> (i32, i32) {
    %c0_i32 = arith.constant 0 : i32
    %c0_i32_0 = arith.constant 0 : i32
    return %arg0, %c0_i32 : i32, i32
  }
}

</mosaic_0001>

<bundles_post_ra>
// kernel: mlp_forward.1
= control target key start
LH: loop header
LB: loop body
LE: loop exit
PB: predicated region body
PF: predicated region fallthrough
CT: control target
= control target key end

     0   :  { %10 = vsyncpa [#allocation3], 0  ;;  %s616_s0 = inlined_call_operand.vmem [shape: f32[16,128], index: 0, kind: input, shape index: {}]   ;;  %s617_s1 = inlined_call_operand.hbm [shape: f32[128,128], index: 1, kind: input, shape index: {}]   ;;  %s618_s2 = inlined_call_operand.vmem [shape: f32[1,128], index: 2, kind: input, shape index: {}]   ;;  %s619_s3 = inlined_call_operand.hbm [shape: f32[128,128], index: 3, kind: input, shape index: {}]   ;;  %s620_s4 = inlined_call_operand.vmem [shape: f32[1,128], index: 4, kind: input, shape index: {}]   ;;  %s621_s5 = inlined_call_operand.vmem [shape: f32[16,128], index: 5, kind: output, shape index: {}]  }
   0x1   :  { %11 = vsyncpa [#allocation5], 0  ;;  %s540_s18 = smov [#allocation2]   ;;  %s492_s22 = scalar_lea.hbm %s617_s1, 2048 }
   0x2   :  { %s19_s19 = sshll.u32 %s540_s18, 4  ;;  %p493_p0 = scmp.ne.s32.totalorder %s617_s1, %s492_s22  ;;  %s20_s19 = int_to_ptr.vmem [resolvable:$true] %s19_s19 }
   0x3   :  { %p496_p1 = scmp.lt.u32.totalorder %s492_s22, %s617_s1 }
   0x5   :  { %p498_p2 = pnand %p496_p1, %p493_p0 }
   0x7   :  { %501 = shalt.err (!%p498_p2)
}
   0x8   :  { %s502_s27 = scalar_lea.vmem %s20_s19, 2048  ;;  %p507_p4 = scmp.lt.s32.totalorder %s20_s19, %s20_s19 }
   0x9   :  { %p503_p3 = scmp.ne.s32.totalorder %s20_s19, %s502_s27  ;;  %p508_p5 = scmp.lt.s32.totalorder %s502_s27, %s502_s27 }
   0xb   :  { %p509_p6 = por %p508_p5, %p507_p4 }
   0xd   :  { %p510_p7 = pnand %p509_p6, %p503_p3 }
   0xf   :  { %513 = shalt.err (!%p510_p7)
}
  0x10   :  { %s541_s28 = smov 128   ;;  %s542_s29 = smov 8  }
  0x11   :  { %25 = dma.hbm_to_vmem [thread:$0]  %s617_s1, 2048, %s20_s19, [#allocation3], %s541_s28, %s541_s28, %s542_s29  }
  0x12   :  { %s543_s7 = smov [#allocation4]   ;;  %s514_s11 = scalar_lea.hbm %s619_s3, 2048 }
  0x13   :  { %s33_s8 = sshll.u32 %s543_s7, 4  ;;  %p515_p8 = scmp.ne.s32.totalorder %s619_s3, %s514_s11  ;;  %s34_s8 = int_to_ptr.vmem [resolvable:$true] %s33_s8 }
  0x14   :  { %p518_p9 = scmp.lt.u32.totalorder %s514_s11, %s619_s3 }
  0x16   :  { %p520_p10 = pnand %p518_p9, %p515_p8 }
  0x18   :  { %523 = shalt.err (!%p520_p10)
}
  0x19   :  { %s524_s16 = scalar_lea.vmem %s34_s8, 2048  ;;  %p529_p12 = scmp.lt.s32.totalorder %s34_s8, %s34_s8 }
  0x1a   :  { %p525_p11 = scmp.ne.s32.totalorder %s34_s8, %s524_s16  ;;  %p530_p13 = scmp.lt.s32.totalorder %s524_s16, %s524_s16 }
  0x1c   :  { %p531_p0 = por %p530_p13, %p529_p12 }
  0x1e   :  { %p532_p1 = pnand %p531_p0, %p525_p11 }
  0x20   :  { %535 = shalt.err (!%p532_p1)
}
  0x21   :  { %39 = dma.hbm_to_vmem [thread:$0]  %s619_s3, 2048, %s34_s8, [#allocation5], %s541_s28, %s541_s28, %s542_s29  }
  0x22   :  { %536 = dma.done.wait [#allocation3], 2048  }
  0x23   :  { %537 = vsyncadd [#allocation3], 4294965248 }
  0x24   :  { %538 = dma.done.wait [#allocation5], 2048  }
  0x25   :  { %539 = vsyncadd [#allocation5], 4294965248  ;;  %v50_v0 = vld [vmem:[#allocation2] sm:$0xff]  ;;  %v51_v1 = vld [vmem:[#allocation2 + $0x8] sm:$0xff] }
  0x26   :  { %v52_v2 = vld [vmem:[#allocation2 + $0x10] sm:$0xff]  ;;  %v416_v3 = vpack.c.bf16 %v51_v1, %v50_v0  ;;  %v53_v4 = vld [vmem:[#allocation2 + $0x18] sm:$0xff]  ;;  %v54_v6 = vld [vmem:[#allocation2 + $0x20] sm:$0xff] }
  0x27   :  { %v420_v5 = vpack.c.bf16 %v53_v4, %v52_v2  ;;  %v55_v7 = vld [vmem:[#allocation2 + $0x28] sm:$0xff]  ;;  %v48_v9 = vld [vmem:[%s616_s0] sm:$0xff]  ;;  %v56_v10 = vld [vmem:[#allocation2 + $0x30] sm:$0xff] }
  0x28   :  { %417 = vmatprep.subr.bf16.mxu0 %v416_v3  ;;  %v424_v8 = vpack.c.bf16 %v55_v7, %v54_v6  ;;  %v57_v11 = vld [vmem:[#allocation2 + $0x38] sm:$0xff]  ;;  %378 = vmatprep.mubr.f32.mxu0 %v48_v9  ;;  %v58_v13 = vld [vmem:[#allocation2 + $0x40] sm:$0xff]  ;;  %v59_v14 = vld [vmem:[#allocation2 + $0x48] sm:$0xff] }
  0x29   :  { %419 = vmatpush3.bf16.msra.mxu0 %v416_v3  ;;  %v428_v12 = vpack.c.bf16 %v57_v11, %v56_v10  ;;  %v432_v15 = vpack.c.bf16 %v59_v14, %v58_v13  ;;  %v60_v16 = vld [vmem:[#allocation2 + $0x50] sm:$0xff]  ;;  %v61_v17 = vld [vmem:[#allocation2 + $0x58] sm:$0xff]  ;;  %v62_v19 = vld [vmem:[#allocation2 + $0x60] sm:$0xff] }
  0x2a   :  { %421 = vmatprep.subr.bf16.mxu0 %v420_v5  ;;  %v436_v18 = vpack.c.bf16 %v61_v17, %v60_v16  ;;  %v63_v20 = vld [vmem:[#allocation2 + $0x68] sm:$0xff]  ;;  %v64_v22 = vld [vmem:[#allocation2 + $0x70] sm:$0xff]  ;;  %v65_v23 = vld [vmem:[#allocation2 + $0x78] sm:$0xff] }
  0x2b   :  { %v440_v21 = vpack.c.bf16 %v63_v20, %v62_v19  ;;  %v444_v24 = vpack.c.bf16 %v65_v23, %v64_v22  ;;  %v49_v25 = vld [vmem:[%s616_s0 + $0x8] sm:$0xff]  ;;  %v202_v26 = vld [vmem:[#allocation4] sm:$0xff]  ;;  %v204_v28 = vld [vmem:[#allocation4 + $0x10] sm:$0xff] }
  0x2c   :  { %v203_v27 = vld [vmem:[#allocation4 + $0x8] sm:$0xff]  ;;  %v205_v30 = vld [vmem:[#allocation4 + $0x18] sm:$0xff]  ;;  %v206_v32 = vld [vmem:[#allocation4 + $0x20] sm:$0xff] }
  0x2d   :  { %423 = vmatpush3.bf16.msra.mxu0 %v420_v5  ;;  %v448_v29 = vpack.c.bf16 %v203_v27, %v202_v26  ;;  %v452_v31 = vpack.c.bf16 %v205_v30, %v204_v28  ;;  %v207_v33 = vld [vmem:[#allocation4 + $0x28] sm:$0xff]  ;;  %v208_v35 = vld [vmem:[#allocation4 + $0x30] sm:$0xff]  ;;  %v209_v36 = vld [vmem:[#allocation4 + $0x38] sm:$0xff] }
  0x2e   :  { %425 = vmatprep.subr.bf16.mxu0 %v424_v8  ;;  %v456_v34 = vpack.c.bf16 %v207_v33, %v206_v32  ;;  %v460_v37 = vpack.c.bf16 %v209_v36, %v208_v35  ;;  %v210_v38 = vld [vmem:[#allocation4 + $0x40] sm:$0xff]  ;;  %v211_v39 = vld [vmem:[#allocation4 + $0x48] sm:$0xff]  ;;  %v212_v41 = vld [vmem:[#allocation4 + $0x50] sm:$0xff] }
  0x2f   :  { %449 = vmatprep.subr.bf16.mxu1 %v448_v29  ;;  %v464_v40 = vpack.c.bf16 %v211_v39, %v210_v38  ;;  %v213_v42 = vld [vmem:[#allocation4 + $0x58] sm:$0xff]  ;;  %v214_v44 = vld [vmem:[#allocation4 + $0x60] sm:$0xff]  ;;  %v215_v45 = vld [vmem:[#allocation4 + $0x68] sm:$0xff] }
  0x30   :  { %451 = vmatpush3.bf16.msra.mxu1 %v448_v29  ;;  %v468_v43 = vpack.c.bf16 %v213_v42, %v212_v41  ;;  %v472_v46 = vpack.c.bf16 %v215_v45, %v214_v44  ;;  %v216_v47 = vld [vmem:[#allocation4 + $0x70] sm:$0xff]  ;;  %v217_v48 = vld [vmem:[#allocation4 + $0x78] sm:$0xff]  ;;  %v308_v50 = vld [vmem:[%s618_s2] ss:$0 sm:$0xff] }
  0x31   :  { %427 = vmatpush3.bf16.msra.mxu0 %v424_v8  ;;  %453 = vmatprep.subr.bf16.mxu1 %v452_v31  ;;  %v476_v49 = vpack.c.bf16 %v217_v48, %v216_v47  ;;  %v309_v41 = vld [vmem:[%s620_s4] ss:$0 sm:$0xff] }
  0x32   :  { %429 = vmatprep.subr.bf16.mxu0 %v428_v12 }
  0x34   :  { %455 = vmatpush3.bf16.msra.mxu1 %v452_v31 }
  0x35   :  { %431 = vmatpush3.bf16.msra.mxu0 %v428_v12  ;;  %457 = vmatprep.subr.bf16.mxu1 %v456_v34 }
  0x36   :  { %433 = vmatprep.subr.bf16.mxu0 %v432_v15 }
  0x38   :  { %459 = vmatpush3.bf16.msra.mxu1 %v456_v34 }
  0x39   :  { %435 = vmatpush3.bf16.msra.mxu0 %v432_v15  ;;  %461 = vmatprep.subr.bf16.mxu1 %v460_v37 }
  0x3a   :  { %437 = vmatprep.subr.bf16.mxu0 %v436_v18 }
  0x3c   :  { %463 = vmatpush3.bf16.msra.mxu1 %v460_v37 }
  0x3d   :  { %439 = vmatpush3.bf16.msra.mxu0 %v436_v18  ;;  %465 = vmatprep.subr.bf16.mxu1 %v464_v40 }
  0x3e   :  { %441 = vmatprep.subr.bf16.mxu0 %v440_v21 }
  0x40   :  { %467 = vmatpush3.bf16.msra.mxu1 %v464_v40 }
  0x41   :  { %443 = vmatpush3.bf16.msra.mxu0 %v440_v21  ;;  %469 = vmatprep.subr.bf16.mxu1 %v468_v43 }
  0x42   :  { %445 = vmatprep.subr.bf16.mxu0 %v444_v24 }
  0x44   :  { %471 = vmatpush3.bf16.msra.mxu1 %v468_v43 }
  0x45   :  { %447 = vmatpush3.bf16.msra.mxu0 %v444_v24  ;;  %473 = vmatprep.subr.bf16.mxu1 %v472_v46 }
  0x48   :  { %379 = vmatmul.mubr.f32.vlgmr.msra.gmra.mrb[0].mxu0 %v49_v25  ;;  %475 = vmatpush3.bf16.msra.mxu1 %v472_v46 }
  0x49   :  { %477 = vmatprep.subr.bf16.mxu1 %v476_v49 }
  0x4c   :  { %479 = vmatpush3.bf16.msra.mxu1 %v476_v49 }
 0x11b   :  { %v380_v51 = vpop.f32.mrb[0].mxu0 }
 0x11c   :  { %v145_v52 = vadd.f32 %v380_v51, %v308_v50  ;;  %v139_v53 = vpop.f32.mrb[1].mxu0 }
 0x11d   :  { %v140_v54 = vadd.f32 %v308_v50, %v139_v53 }
 0x11e   :  { %v151_v55 = vmul.f32 0.70710677, %v145_v52  ;;  %v149_v38 = vmul.f32 0.5, %v145_v52 }
 0x11f   :  { %v150_v56 = vmul.f32 0.70710677, %v140_v54  ;;  %v148_v36 = vmul.f32 0.5, %v140_v54 }
 0x120   :  { %v153_v57 = vand.u32 2147483647, %v151_v55  ;;  %vm193_vm0 = vcmp.lt.f32.partialorder %v151_v55, 0.0 }
 0x121   :  { %v152_v58 = vand.u32 2147483647, %v150_v56  ;;  %vm192_vm1 = vcmp.lt.f32.partialorder %v150_v56, 0.0 }
 0x122   :  { %v155_v59 = vmul.f32 0.3275911, %v153_v57  ;;  %v181_v63 = vsub.f32 0.0, %v153_v57 }
 0x123   :  { %v154_v60 = vmul.f32 0.3275911, %v152_v58  ;;  %v180_v0 = vsub.f32 0.0, %v152_v58 }
 0x124   :  { %v157_v61 = vadd.f32 1.0, %v155_v59  ;;  %v183_v2 = vmul.f32 %v181_v63, %v153_v57 }
 0x125   :  { %v156_v62 = vadd.f32 1.0, %v154_v60  ;;  %v182_v4 = vmul.f32 %v180_v0, %v152_v58 }
 0x126   :  { %484 = vrcp.f32 %v157_v61  ;;  %v186_v8 = vmul.f32 1.442695, %v183_v2 }
 0x127   :  { %486 = vrcp.f32 %v156_v62  ;;  %v184_v10 = vmul.f32 1.442695, %v182_v4 }
 0x128   :  { %488 = vpow2.f32 %v186_v8 }
 0x129   :  { %490 = vpow2.f32 %v184_v10 }
 0x130   :  { %v485_v1 = vpop.eup %484 }
 0x131   :  { %v487_v3 = vpop.eup %486  ;;  %v163_v5 = vmul.f32 1.0614054, %v485_v1 }
 0x132   :  { %v162_v6 = vmul.f32 1.0614054, %v487_v3  ;;  %v489_v24 = vpop.eup %488 }
 0x133   :  { %v165_v7 = vadd.f32 -1.4531521, %v163_v5  ;;  %v491_v26 = vpop.eup %490 }
 0x134   :  { %v164_v9 = vadd.f32 -1.4531521, %v162_v6 }
 0x135   :  { %v167_v11 = vmul.f32 %v485_v1, %v165_v7 }
 0x136   :  { %v166_v12 = vmul.f32 %v487_v3, %v164_v9 }
 0x137   :  { %v169_v13 = vadd.f32 1.4214138, %v167_v11 }
 0x138   :  { %v168_v14 = vadd.f32 1.4214138, %v166_v12 }
 0x139   :  { %v171_v15 = vmul.f32 %v485_v1, %v169_v13 }
 0x13a   :  { %v170_v16 = vmul.f32 %v487_v3, %v168_v14 }
 0x13b   :  { %v173_v17 = vadd.f32 -0.28449672, %v171_v15 }
 0x13c   :  { %v172_v18 = vadd.f32 -0.28449672, %v170_v16 }
 0x13d   :  { %v175_v19 = vmul.f32 %v485_v1, %v173_v17 }
 0x13e   :  { %v174_v20 = vmul.f32 %v487_v3, %v172_v18 }
 0x13f   :  { %v177_v21 = vadd.f32 0.2548296, %v175_v19 }
 0x140   :  { %v176_v22 = vadd.f32 0.2548296, %v174_v20 }
 0x141   :  { %v179_v23 = vmul.f32 %v485_v1, %v177_v21 }
 0x142   :  { %v178_v25 = vmul.f32 %v487_v3, %v176_v22 }
 0x143   :  { %v189_v27 = vmul.f32 %v489_v24, %v179_v23 }
 0x144   :  { %v188_v28 = vmul.f32 %v491_v26, %v178_v25 }
 0x145   :  { %v191_v29 = vsub.f32 1.0, %v189_v27 }
 0x146   :  { %v190_v30 = vsub.f32 1.0, %v188_v28 }
 0x147   :  { %v195_v31 = vsub.f32 0.0, %v191_v29 }
 0x148   :  { %v194_v32 = vsub.f32 0.0, %v190_v30 }
 0x149   :  { %v197_v33 = vsel %vm193_vm0, %v195_v31, %v191_v29 }
 0x14a   :  { %v196_v34 = vsel %vm192_vm1, %v194_v32, %v190_v30  ;;  %v199_v35 = vadd.f32 1.0, %v197_v33 }
 0x14b   :  { %v198_v37 = vadd.f32 1.0, %v196_v34 }
 0x14c   :  { %v201_v40 = vmul.f32 %v199_v35, %v149_v38 }
 0x14d   :  { %v200_v39 = vmul.f32 %v198_v37, %v148_v36 }
 0x14f   :  { %413 = vmatprep.mubr.f32.mxu1 %v200_v39 }
 0x150   :  { %414 = vmatmul.mubr.f32.vlgmr.msra.gmra.mrb[0].mxu1 %v201_v40 }
 0x223   :  { %v415_v42 = vpop.f32.mrb[0].mxu1 }
 0x224   :  { %v297_v43 = vadd.f32 %v415_v42, %v309_v41  ;;  %v291_v44 = vpop.f32.mrb[1].mxu1 }
 0x225   :  { %v292_v45 = vadd.f32 %v309_v41, %v291_v44 }
 0x226   :  { %301 = vst [vmem:[%s621_s5 + $0x8] sm:$0xff] %v297_v43 }
 0x227   :  { %300 = vst [vmem:[%s621_s5] sm:$0xff] %v292_v45 }
 0x228   :  { %306 = vsyncpa [#allocation3], 1 }
 0x229   :  { %307 = vsyncpa [#allocation5], 1 }

</bundles_post_ra>
